<compile_context>
chip_gen: v7x
topology: tpu7x:2x2x1
jax: 0.10.0
libtpu: 0.0.40
codegen_flags: <defaults>
</compile_context>

<pallas_src>
import math

import jax
import jax.numpy as jnp
from jax import lax
from jax.experimental import pallas as pl
from jax.experimental.pallas import tpu as pltpu


# ----------------------------------------------------------------------------
# Tiling helpers
# ----------------------------------------------------------------------------
def _pick_tile_and_pad(dim, preferred, align):
    """Return (tile, padded_dim). tile is a multiple of `align` (or the full
    dim); padded_dim is dim rounded up so tile divides it exactly."""
    if dim <= preferred:
        return dim, dim                       # single full-extent block: always legal
    max_t = (preferred // align) * align
    for t in range(max_t, 0, -align):
        if dim % t == 0:
            return t, dim
    padded = -(-dim // align) * align         # pad up, then tile the padded dim
    for t in range(max_t, 0, -align):
        if padded % t == 0:
            return t, padded
    return align, padded


def _pick_tq(Tq, Tk, q_cols, kv_cols, heads, elt, attn_elt,
             budget=12 * 1024 * 1024):
    """Largest query tile (divisor of Tq, multiple of 8, or Tq itself) whose
    double-buffered SDPA working set fits `budget` (safe for v7x VMEM)."""
    def est(tq):
        io_blocks = (tq * q_cols + Tk * kv_cols + tq * q_cols) * elt
        p_block = heads * tq * Tk * attn_elt
        tmp = 4 * tq * Tk * 4                 # scores / exp / probs f32 live set
        return 2 * (io_blocks + p_block) + tmp

    cands = sorted({Tq} | {t for t in range(8, Tq, 8) if Tq % t == 0},
                   reverse=True)
    for tq in cands:
        if est(tq) <= budget:
            return tq
    # TODO(synk): flash-style Tk tiling with online softmax for sequences so
    # long that even the smallest query tile does not fit the VMEM budget.
    return cands[-1]


# ----------------------------------------------------------------------------
# Pallas kernels
# ----------------------------------------------------------------------------
def _linear_kernel(x_ref, wt_ref, b_ref, o_ref, acc_ref):
    # x: (tm, tk), wt: (tk, tn) [pre-transposed], b: (1, tn) f32
    # o: (tm, tn) compute dtype, acc: (tm, tn) f32 scratch
    k = pl.program_id(2)

    @pl.when(k == 0)
    def _():
        acc_ref[...] = jnp.zeros_like(acc_ref)

    acc_ref[...] += jnp.dot(
        x_ref[...], wt_ref[...], preferred_element_type=jnp.float32
    )

    @pl.when(k == pl.num_programs(2) - 1)
    def _():
        o_ref[...] = (acc_ref[...] + b_ref[...]).astype(o_ref.dtype)


def _attend_heads(q_all, k_all, v_all, o_ref, p_ref, heads, head_dim):
    """q_all: (tq, C) already scaled, k_all/v_all: (Tk, C).
    Writes o_ref (1, tq, C) and p_ref (1, heads, tq, Tk)."""
    outs = []
    for h in range(heads):                     # static unroll over heads
        sl = slice(h * head_dim, (h + 1) * head_dim)
        qh, kh, vh = q_all[:, sl], k_all[:, sl], v_all[:, sl]
        # QK^T contracting on head_dim (no transpose of the K tile), f32 acc.
        s = lax.dot_general(qh, kh, (((1,), (1,)), ((), ())),
                            preferred_element_type=jnp.float32)   # (tq, Tk)
        m = jnp.max(s, axis=-1, keepdims=True)
        e = jnp.exp(s - m)
        denom = jnp.sum(e, axis=-1, keepdims=True)
        probs = e / denom                      # exact softmax: stored rows sum to 1
        p_ref[0, h] = probs.astype(p_ref.dtype)
        outs.append(jnp.dot(probs.astype(vh.dtype), vh,
                            preferred_element_type=jnp.float32))  # (tq, hd)
    # Single lane-dense store of the merged heads: (tq, C), already in the
    # (B*T, C) layout the output projection consumes (no host transpose).
    o_ref[0] = jnp.concatenate(outs, axis=-1).astype(o_ref.dtype)


def _make_fused_sdpa_kernel(heads, head_dim, C):
    scale = 1.0 / math.sqrt(head_dim)

    def kernel(q_ref, kv_ref, o_ref, p_ref):
        # q_ref:  (1, tq, 3C)  -- query rows of the fused QKV buffer
        # kv_ref: (1, Tk, 3C)  -- full key/value rows of the same buffer
        q_rows = q_ref[0]
        kv_rows = kv_ref[0]
        _attend_heads(q_rows[:, 0:C] * scale,        # Q columns, scale folded in
                      kv_rows[:, C:2 * C],           # K columns
                      kv_rows[:, 2 * C:3 * C],       # V columns
                      o_ref, p_ref, heads, head_dim)

    return kernel


def _make_split_sdpa_kernel(heads, head_dim):
    scale = 1.0 / math.sqrt(head_dim)

    def kernel(q_ref, k_ref, v_ref, o_ref, p_ref):
        _attend_heads(q_ref[0] * scale, k_ref[0], v_ref[0],
                      o_ref, p_ref, heads, head_dim)

    return kernel


# ----------------------------------------------------------------------------
# pallas_call wrappers
# ----------------------------------------------------------------------------
def pallas_linear(x2d, w_t, b, *, tm=512, tn=512, tk=512):
    """y = x2d @ w_t + b. w_t pre-transposed (C_in, C_out). Output dtype ==
    x2d.dtype (compute dtype); accumulation in f32."""
    M, K = x2d.shape
    K2, N = w_t.shape
    assert K == K2 and b.shape == (N,)
    out_dtype = x2d.dtype

    tm, Mp = _pick_tile_and_pad(M, tm, 8)
    tk, Kp = _pick_tile_and_pad(K, tk, 128)
    tn, Np = _pick_tile_and_pad(N, tn, 128)

    if (Mp, Kp) != (M, K):
        x2d = jnp.pad(x2d, ((0, Mp - M), (0, Kp - K)))
    if (Kp, Np) != (K, N):
        w_t = jnp.pad(w_t, ((0, Kp - K), (0, Np - N)))
    b2 = b.reshape(1, N).astype(jnp.float32)
    if Np != N:
        b2 = jnp.pad(b2, ((0, 0), (0, Np - N)))

    grid = (Mp // tm, Np // tn, Kp // tk)
    y = pl.pallas_call(
        _linear_kernel,
        out_shape=jax.ShapeDtypeStruct((Mp, Np), out_dtype),
        grid=grid,
        in_specs=[
            pl.BlockSpec((tm, tk), lambda i, j, k: (i, k)),
            pl.BlockSpec((tk, tn), lambda i, j, k: (k, j)),
            pl.BlockSpec((1, tn), lambda i, j, k: (0, j)),
        ],
        out_specs=pl.BlockSpec((tm, tn), lambda i, j, k: (i, j)),
        scratch_shapes=[pltpu.VMEM((tm, tn), jnp.float32)],
        compiler_params=pltpu.CompilerParams(
            dimension_semantics=("parallel", "parallel", "arbitrary"),
            vmem_limit_bytes=32 * 1024 * 1024,
        ),
    )(x2d, w_t, b2)

    if (Mp, Np) != (M, N):
        y = y[:M, :N]
    return y


def pallas_sdpa_fused(qkv3, heads, head_dim, *, attn_dtype=None):
    """Self-attention from the fused QKV buffer.
    qkv3: (B, T, 3C) -> out (B, T, C) in qkv3.dtype, attn (B, H, T, T)."""
    B, T, C3 = qkv3.shape
    C = C3 // 3
    attn_dtype = attn_dtype or qkv3.dtype
    elt = jnp.dtype(qkv3.dtype).itemsize
    a_elt = jnp.dtype(attn_dtype).itemsize
    tq = _pick_tq(T, T, q_cols=C3, kv_cols=C3, heads=heads,
                  elt=elt, attn_elt=a_elt)

    kernel = _make_fused_sdpa_kernel(heads, head_dim, C)
    out3, attn = pl.pallas_call(
        kernel,
        out_shape=(jax.ShapeDtypeStruct((B, T, C), qkv3.dtype),
                   jax.ShapeDtypeStruct((B, heads, T, T), attn_dtype)),
        grid=(B, T // tq),
        in_specs=[
            pl.BlockSpec((1, tq, C3), lambda b, qi: (b, qi, 0)),   # Q rows
            pl.BlockSpec((1, T, C3), lambda b, qi: (b, 0, 0)),     # K/V rows
        ],
        out_specs=(
            pl.BlockSpec((1, tq, C), lambda b, qi: (b, qi, 0)),
            pl.BlockSpec((1, heads, tq, T), lambda b, qi: (b, 0, qi, 0)),
        ),
        compiler_params=pltpu.CompilerParams(
            dimension_semantics=("parallel", "parallel"),
            vmem_limit_bytes=32 * 1024 * 1024,
        ),
    )(qkv3, qkv3)
    return out3, attn


def pallas_sdpa(q3, k3, v3, heads, head_dim, *, attn_dtype=None):
    """General (cross-attention) SDPA.
    q3: (B, Tq, C), k3/v3: (B, Tk, C) -> out (B, Tq, C), attn (B, H, Tq, Tk)."""
    B, Tq, C = q3.shape
    Tk = k3.shape[1]
    attn_dtype = attn_dtype or q3.dtype
    elt = jnp.dtype(q3.dtype).itemsize
    a_elt = jnp.dtype(attn_dtype).itemsize
    tq = _pick_tq(Tq, Tk, q_cols=C, kv_cols=2 * C, heads=heads,
                  elt=elt, attn_elt=a_elt)

    kernel = _make_split_sdpa_kernel(heads, head_dim)
    out3, attn = pl.pallas_call(
        kernel,
        out_shape=(jax.ShapeDtypeStruct((B, Tq, C), q3.dtype),
                   jax.ShapeDtypeStruct((B, heads, Tq, Tk), attn_dtype)),
        grid=(B, Tq // tq),
        in_specs=[
            pl.BlockSpec((1, tq, C), lambda b, qi: (b, qi, 0)),
            pl.BlockSpec((1, Tk, C), lambda b, qi: (b, 0, 0)),
            pl.BlockSpec((1, Tk, C), lambda b, qi: (b, 0, 0)),
        ],
        out_specs=(
            pl.BlockSpec((1, tq, C), lambda b, qi: (b, qi, 0)),
            pl.BlockSpec((1, heads, tq, Tk), lambda b, qi: (b, 0, qi, 0)),
        ),
        compiler_params=pltpu.CompilerParams(
            dimension_semantics=("parallel", "parallel"),
            vmem_limit_bytes=32 * 1024 * 1024,
        ),
    )(q3, k3, v3)
    return out3, attn


# ----------------------------------------------------------------------------
# MultiHeadAttention module (forward-pass equivalent)
# ----------------------------------------------------------------------------
class MultiHeadAttentionPallas:
    def __init__(self, d_k, heads, key, compute_dtype=jnp.bfloat16):
        assert d_k % heads == 0
        self.d_k = d_k
        self.heads = heads
        self.head_dim = d_k // heads
        self.compute_dtype = compute_dtype     # bf16 default (MXU operands); f32 accumulation

        keys = jax.random.split(key, 8)
        bound = 1.0 / math.sqrt(d_k)           # torch nn.Linear default init range

        def init_linear(kw, kb):
            w = jax.random.uniform(kw, (d_k, d_k), jnp.float32, -bound, bound)
            b = jax.random.uniform(kb, (d_k,), jnp.float32, -bound, bound)
            return w, b

        # f32 master parameters (torch convention, also used by the reference)
        self.wq, self.bq = init_linear(keys[0], keys[1])
        self.wk, self.bk = init_linear(keys[2], keys[3])
        self.wv, self.bv = init_linear(keys[4], keys[5])
        self.wo, self.bo = init_linear(keys[6], keys[7])

        cdt = compute_dtype
        # Pre-transposed (C_in, C_out) weights in compute dtype (no in-kernel .T)
        self.wq_t = jnp.asarray(self.wq.T, cdt)
        self.wk_t = jnp.asarray(self.wk.T, cdt)
        self.wv_t = jnp.asarray(self.wv.T, cdt)
        self.wo_t = jnp.asarray(self.wo.T, cdt)
        # Fused QKV weight (C, 3C) and bias (3C,)
        self.w_qkv_t = jnp.asarray(
            jnp.concatenate([self.wq, self.wk, self.wv], axis=0).T, cdt)
        self.b_qkv = jnp.concatenate([self.bq, self.bk, self.bv], axis=0)

    def __call__(self, x, k=None, v=None, mask=None):
        if mask is not None:
            # TODO(synk): attention masking not implemented in the SDPA kernel.
            raise NotImplementedError("mask is not supported by the Pallas SDPA kernel")

        B, T, C = x.shape
        H, hd = self.heads, self.head_dim
        cdt = self.compute_dtype
        x2d = x.reshape(B * T, C).astype(cdt)

        if k is None and v is None:
            # Self-attention fast path: one fused QKV GEMM (x read once, 3x N);
            # heads are split inside the SDPA kernel -> no host transposes/slices.
            qkv = pallas_linear(x2d, self.w_qkv_t, self.b_qkv)     # (B*T, 3C) cdt
            qkv3 = qkv.reshape(B, T, 3 * C)                        # free reshape
            out3, attn = pallas_sdpa_fused(qkv3, H, hd)            # (B,T,C), (B,H,T,T)
        else:
            k_in = x if k is None else k
            v_in = x if v is None else v
            Tk, Tv = k_in.shape[1], v_in.shape[1]
            q3 = pallas_linear(x2d, self.wq_t, self.bq).reshape(B, T, C)
            k3 = pallas_linear(k_in.reshape(B * Tk, C).astype(cdt),
                               self.wk_t, self.bk).reshape(B, Tk, C)
            v3 = pallas_linear(v_in.reshape(B * Tv, C).astype(cdt),
                               self.wv_t, self.bv).reshape(B, Tv, C)
            out3, attn = pallas_sdpa(q3, k3, v3, H, hd)

        # SDPA already wrote merged heads in (B, T, C) layout -> no transpose.
        out2d = out3.reshape(B * T, C)
        out = pallas_linear(out2d, self.wo_t, self.bo).reshape(B, T, C)
        return out, attn


# ----------------------------------------------------------------------------
# Reference (pure jnp) for sanity check
# ----------------------------------------------------------------------------
def reference_forward(mha, x):
    B, T, C = x.shape
    H, hd = mha.heads, mha.head_dim
    q = x.reshape(B * T, C) @ mha.wq.T + mha.bq
    k = x.reshape(B * T, C) @ mha.wk.T + mha.bk
    v = x.reshape(B * T, C) @ mha.wv.T + mha.bv
    q = q.reshape(B, T, H, hd).transpose(0, 2, 1, 3)
    k = k.reshape(B, T, H, hd).transpose(0, 2, 1, 3)
    v = v.reshape(B, T, H, hd).transpose(0, 2, 1, 3)
    s = jnp.einsum("bhqd,bhkd->bhqk", q, k) / math.sqrt(hd)
    p = jax.nn.softmax(s, axis=-1)
    o = jnp.einsum("bhqk,bhkd->bhqd", p, v)
    o = o.transpose(0, 2, 1, 3).reshape(B, T, C)
    o = o.reshape(B * T, C) @ mha.wo.T + mha.bo
    return o.reshape(B, T, C), p


if __name__ == "__main__":
    key = jax.random.PRNGKey(0)
    k_param, k_x = jax.random.split(key)

    B, T, d_k, heads = 2, 8, 32, 4
    x = jax.random.normal(k_x, (B, T, d_k), dtype=jnp.float32)

    # ---- f32 compute path: tight numerical check against pure-JAX reference
    mha_f32 = MultiHeadAttentionPallas(d_k, heads, k_param, compute_dtype=jnp.float32)
    out, attn = mha_f32(x)
    out = jax.block_until_ready(out)
    attn = jax.block_until_ready(attn)

    ref_out, ref_attn = reference_forward(mha_f32, x)
    assert out.shape == (B, T, d_k)
    assert attn.shape == (B, heads, T, T)
    assert jnp.allclose(out, ref_out, atol=2e-3, rtol=2e-3)
    assert jnp.allclose(attn, ref_attn, atol=2e-3, rtol=2e-3)

    # ---- default bf16 compute path (recommended on v6e/v7x): loose check
    mha_bf16 = MultiHeadAttentionPallas(d_k, heads, k_param)   # compute_dtype=bf16
    out_b, attn_b = mha_bf16(x)
    out_b = jax.block_until_ready(out_b)
    attn_b = jax.block_until_ready(attn_b)
    assert out_b.shape == (B, T, d_k) and attn_b.shape == (B, heads, T, T)
    assert float(jnp.max(jnp.abs(out_b.astype(jnp.float32) - ref_out))) < 0.25
    assert float(jnp.max(jnp.abs(attn_b.astype(jnp.float32) - ref_attn))) < 0.1

    print("KERNEL_OK")
</pallas_src>

<mosaic_0001>
module attributes {stable_mosaic.version = 11 : i64} {
  func.func @_linear_kernel(%arg0: i32, %arg1: i32, %arg2: i32, %arg3: memref<16x32xf32, #tpu.memory_space<vmem>>, %arg4: memref<32x96xf32, #tpu.memory_space<vmem>>, %arg5: memref<1x96xf32, #tpu.memory_space<vmem>>, %arg6: memref<16x96xf32, #tpu.memory_space<vmem>>, %arg7: memref<16x96xf32, #tpu.memory_space<vmem>>) attributes {dimension_semantics = [#tpu.dimension_semantics<parallel>, #tpu.dimension_semantics<parallel>, #tpu.dimension_semantics<arbitrary>], iteration_bounds = array<i64: 1, 1, 1>, scalar_prefetch = 0 : i64, scratch_operands = 1 : i64, tpu.core_type = #tpu.core_type<tc>, window_params = [{transform_indices = @transform_0, window_bounds = array<i64: 16, 32>}, {transform_indices = @transform_1, window_bounds = array<i64: 32, 96>}, {transform_indices = @transform_2, window_bounds = array<i64: 1, 96>}, {transform_indices = @transform_3, window_bounds = array<i64: 16, 96>}]} {
    %c0_i32 = arith.constant 0 : i32
    %0 = arith.cmpi eq, %arg2, %c0_i32 : i32
    %1 = arith.extui %0 : i1 to i32
    %c0_i32_0 = arith.constant 0 : i32
    %2 = arith.cmpi ne, %1, %c0_i32_0 : i32
    scf.if %2 {
      %cst_10 = arith.constant 0.000000e+00 : f32
      %12 = vector.broadcast %cst_10 : f32 to vector<16x96xf32>
      %c0_11 = arith.constant 0 : index
      %c0_12 = arith.constant 0 : index
      %13 = vector.load %arg7[%c0_11, %c0_12] : memref<16x96xf32, #tpu.memory_space<vmem>>, vector<16x96xf32>
      tpu.vector_store %arg7[%c0_11, %c0_12], %12 {strides = array<i32>} : memref<16x96xf32, #tpu.memory_space<vmem>>, vector<16x96xf32>,
    } else {
    }
    %c0 = arith.constant 0 : index
    %c0_1 = arith.constant 0 : index
    %3 = vector.load %arg7[%c0, %c0_1] : memref<16x96xf32, #tpu.memory_space<vmem>>, vector<16x96xf32>
    %c0_2 = arith.constant 0 : index
    %c0_3 = arith.constant 0 : index
    %4 = vector.load %arg3[%c0_2, %c0_3] : memref<16x32xf32, #tpu.memory_space<vmem>>, vector<16x32xf32>
    %c0_4 = arith.constant 0 : index
    %c0_5 = arith.constant 0 : index
    %5 = vector.load %arg4[%c0_4, %c0_5] : memref<32x96xf32, #tpu.memory_space<vmem>>, vector<32x96xf32>
    %cst = arith.constant dense<0.000000e+00> : vector<16x96xf32>
    %6 = tpu.matmul %4, %5, %cst {dimension_numbers = #tpu.dot_dimension_numbers<[1], [0], [0], [1], [0, 0, 1, 1], [], []>} : vector<16x32xf32>, vector<32x96xf32>, vector<16x96xf32> -> vector<16x96xf32>
    %7 = arith.addf %3, %6 : vector<16x96xf32>
    %c0_6 = arith.constant 0 : index
    %c0_7 = arith.constant 0 : index
    %8 = vector.load %arg7[%c0_6, %c0_7] : memref<16x96xf32, #tpu.memory_space<vmem>>, vector<16x96xf32>
    tpu.vector_store %arg7[%c0_6, %c0_7], %7 {strides = array<i32>} : memref<16x96xf32, #tpu.memory_space<vmem>>, vector<16x96xf32>,
    %c0_i32_8 = arith.constant 0 : i32
    %9 = arith.cmpi eq, %arg2, %c0_i32_8 : i32
    %10 = arith.extui %9 : i1 to i32
    %c0_i32_9 = arith.constant 0 : i32
    %11 = arith.cmpi ne, %10, %c0_i32_9 : i32
    scf.if %11 {
      %c0_10 = arith.constant 0 : index
      %c0_11 = arith.constant 0 : index
      %12 = vector.load %arg7[%c0_10, %c0_11] : memref<16x96xf32, #tpu.memory_space<vmem>>, vector<16x96xf32>
      %c0_12 = arith.constant 0 : index
      %c0_13 = arith.constant 0 : index
      %13 = vector.load %arg5[%c0_12, %c0_13] : memref<1x96xf32, #tpu.memory_space<vmem>>, vector<1x96xf32>
      %14 = vector.broadcast %13 : vector<1x96xf32> to vector<16x96xf32>
      %15 = arith.addf %12, %14 : vector<16x96xf32>
      %c0_14 = arith.constant 0 : index
      %c0_15 = arith.constant 0 : index
      %16 = vector.load %arg6[%c0_14, %c0_15] : memref<16x96xf32, #tpu.memory_space<vmem>>, vector<16x96xf32>
      tpu.vector_store %arg6[%c0_14, %c0_15], %15 {strides = array<i32>} : memref<16x96xf32, #tpu.memory_space<vmem>>, vector<16x96xf32>,
    } else {
    }
    return
  }
  func.func @transform_0(%arg0: i32, %arg1: i32, %arg2: i32) -> (i32, i32) {
    %c0_i32 = arith.constant 0 : i32
    return %arg0, %arg2 : i32, i32
  }
  func.func @transform_1(%arg0: i32, %arg1: i32, %arg2: i32) -> (i32, i32) {
    %c0_i32 = arith.constant 0 : i32
    return %arg2, %arg1 : i32, i32
  }
  func.func @transform_2(%arg0: i32, %arg1: i32, %arg2: i32) -> (i32, i32) {
    %c0_i32 = arith.constant 0 : i32
    %c0_i32_0 = arith.constant 0 : i32
    return %c0_i32, %arg1 : i32, i32
  }
  func.func @transform_3(%arg0: i32, %arg1: i32, %arg2: i32) -> (i32, i32) {
    %c0_i32 = arith.constant 0 : i32
    return %arg0, %arg1 : i32, i32
  }
}

</mosaic_0001>

<bundles_post_ra>
// kernel: tpu_custom_call.1
= control target key start
LH: loop header
LB: loop body
LE: loop exit
PB: predicated region body
PF: predicated region fallthrough
CT: control target
= control target key end

     0   :  { %8 = vsyncpa [#allocation4], 0  ;;  %s365_s0 = inlined_call_operand.hbm [shape: f32[16,32], index: 0, kind: input, shape index: {}]   ;;  %s366_s1 = inlined_call_operand.hbm [shape: f32[32,96], index: 1, kind: input, shape index: {}]   ;;  %s367_s2 = inlined_call_operand.vmem [shape: f32[1,96], index: 2, kind: input, shape index: {}]   ;;  %s368_s3 = inlined_call_operand.hbm [shape: f32[16,96], index: 3, kind: output, shape index: {}]  }
   0x1   :  { %9 = vsyncpa [#allocation7], 0 }
   0x2   :  { %10 = vsyncpa [#allocation5], 0  ;;  %s285_s12 = smov [#allocation3]   ;;  %s213_s16 = scalar_lea.hbm %s365_s0, 256 }
   0x3   :  { %s16_s13 = sshll.u32 %s285_s12, 4  ;;  %p214_p0 = scmp.ne.s32.totalorder %s365_s0, %s213_s16  ;;  %s17_s13 = int_to_ptr.vmem [resolvable:$true] %s16_s13 }
   0x4   :  { %p217_p1 = scmp.lt.u32.totalorder %s213_s16, %s365_s0 }
   0x6   :  { %p219_p2 = pnand %p217_p1, %p214_p0 }
   0x8   :  { %222 = shalt.err (!%p219_p2)
}
   0x9   :  { %s223_s21 = scalar_lea.vmem %s17_s13, 256  ;;  %p228_p4 = scmp.lt.s32.totalorder %s17_s13, %s17_s13 }
   0xa   :  { %p224_p3 = scmp.ne.s32.totalorder %s17_s13, %s223_s21  ;;  %p229_p5 = scmp.lt.s32.totalorder %s223_s21, %s223_s21 }
   0xc   :  { %p230_p6 = por %p229_p5, %p228_p4 }
   0xe   :  { %p231_p7 = pnand %p230_p6, %p224_p3 }
  0x10   :  { %234 = shalt.err (!%p231_p7)
}
  0x11   :  { %s286_s22 = smov 128   ;;  %s287_s23 = smov 8  }
  0x12   :  { %22 = dma.hbm_to_vmem [thread:$0]  %s365_s0, 256, %s17_s13, [#allocation4], %s286_s22, %s286_s22, %s287_s23  }
  0x13   :  { %s288_s26 = smov [#allocation6]   ;;  %s235_s30 = scalar_lea.hbm %s366_s1, 512 }
  0x14   :  { %s28_s27 = sshll.u32 %s288_s26, 4  ;;  %p236_p8 = scmp.ne.s32.totalorder %s366_s1, %s235_s30  ;;  %s29_s27 = int_to_ptr.vmem [resolvable:$true] %s28_s27 }
  0x15   :  { %p239_p9 = scmp.lt.u32.totalorder %s235_s30, %s366_s1 }
  0x17   :  { %p241_p10 = pnand %p239_p9, %p236_p8 }
  0x19   :  { %244 = shalt.err (!%p241_p10)
}
  0x1a   :  { %s245_s8 = scalar_lea.vmem %s29_s27, 512  ;;  %p250_p12 = scmp.lt.s32.totalorder %s29_s27, %s29_s27 }
  0x1b   :  { %p246_p11 = scmp.ne.s32.totalorder %s29_s27, %s245_s8  ;;  %p251_p13 = scmp.lt.s32.totalorder %s245_s8, %s245_s8 }
  0x1d   :  { %p252_p0 = por %p251_p13, %p250_p12 }
  0x1f   :  { %p253_p1 = pnand %p252_p0, %p246_p11 }
  0x21   :  { %256 = shalt.err (!%p253_p1)
}
  0x22   :  { %34 = dma.hbm_to_vmem [thread:$0]  %s366_s1, 512, %s29_s27, [#allocation7], %s286_s22, %s286_s22, %s287_s23  }
  0x23   :  { %279 = dma.done.wait [#allocation4], 256  }
  0x24   :  { %280 = vsyncadd [#allocation4], 4294967040 }
  0x25   :  { %281 = dma.done.wait [#allocation7], 512  }
  0x26   :  { %282 = vsyncadd [#allocation7], 4294966784  ;;  %vm47_vm0 = vcmask 785408   ;;  %v289_v0 = vmov 0.0   ;;  %vm58_vm1 = vcmask 261120   ;;  %v54_v1 = vld [vmem:[#allocation6] sm:$0xff] }
  0x27   :  { %49 = vst.msk [vmem:[#allocation2 + $0x8] sm:$0xff] %vm47_vm0, %v289_v0  ;;  %48 = vst.msk [vmem:[#allocation2] sm:$0xff] %vm47_vm0, %v289_v0  ;;  %v55_v2 = vld [vmem:[#allocation6 + $0x8] sm:$0xff]  ;;  %v56_v3 = vld [vmem:[#allocation6 + $0x10] sm:$0xff]  ;;  %s290_s11 = smov [#allocation8]  }
  0x28   :  { %v199_v4 = vpack.c.bf16 %v55_v2, %v54_v1  ;;  %v57_v5 = vld [vmem:[#allocation6 + $0x18] sm:$0xff]  ;;  %v52_v6 = vld [vmem:[#allocation3] sm:$0xff]  ;;  %v181_v15 = vld [vmem:[%s367_s2] ss:$0 sm:$0xff]  ;;  %s166_s12 = sshll.u32 %s290_s11, 4  ;;  %s167_s12 = int_to_ptr.vmem [resolvable:$true] %s166_s12 }
  0x29   :  { %v203_v7 = vpack.c.bf16 %v57_v5, %v56_v3  ;;  %196 = vmatprep.mubr.msk.f32.mxu0 %vm58_vm1, %v52_v6  ;;  %v53_v8 = vld [vmem:[#allocation3 + $0x8] sm:$0xff]  ;;  %s257_s13 = scalar_lea.vmem %s167_s12, 256  ;;  %p262_p3 = scmp.lt.s32.totalorder %s167_s12, %s167_s12 }
  0x2a   :  { %200 = vmatprep.subr.bf16.mxu0 %v199_v4  ;;  %p258_p2 = scmp.ne.s32.totalorder %s167_s12, %s257_s13  ;;  %p263_p4 = scmp.lt.s32.totalorder %s257_s13, %s257_s13 }
  0x2b   :  { %202 = vmatpush3.bf16.msra.mxu0 %v199_v4 }
  0x2c   :  { %204 = vmatprep.subr.bf16.mxu0 %v203_v7  ;;  %p264_p5 = por %p263_p4, %p262_p3 }
  0x2e   :  { %v51_v9 = vld [vmem:[#allocation2 + $0x8] sm:$0xff]  ;;  %v50_v10 = vld [vmem:[#allocation2] sm:$0xff]  ;;  %p265_p6 = pnand %p264_p5, %p258_p2 }
  0x2f   :  { %206 = vmatpush3.bf16.msra.mxu0 %v203_v7 }
  0x32   :  { %197 = vmatmul.mubr.msk.f32.vlgmr.msra.gmra.mrb[0].mxu0 %vm58_vm1, %v53_v8 }
 0x105   :  { %v198_v11 = vpop.f32.mrb[0].mxu0 }
 0x106   :  { %v141_v12 = vadd.f32 %v198_v11, %v51_v9  ;;  %v131_v13 = vpop.f32.mrb[1].mxu0 }
 0x107   :  { %v140_v14 = vadd.f32 %v131_v13, %v50_v10 }
 0x108   :  { %144 = vst.msk [vmem:[#allocation2 + $0x8] sm:$0xff] %vm47_vm0, %v141_v12 }
 0x109   :  { %143 = vst.msk [vmem:[#allocation2] sm:$0xff] %vm47_vm0, %v140_v14 }
 0x10f   :  { %v149_v16 = vld [vmem:[#allocation2 + $0x8] sm:$0xff] }
 0x110   :  { %v148_v17 = vld [vmem:[#allocation2] sm:$0xff]  ;;  %v158_v18 = vadd.f32 %v181_v15, %v149_v16 }
 0x111   :  { %v157_v19 = vadd.f32 %v181_v15, %v148_v17 }
 0x112   :  { %160 = vst.msk [vmem:[#allocation8 + $0x8] sm:$0xff] %vm47_vm0, %v158_v18 }
 0x113   :  { %159 = vst.msk [vmem:[#allocation8] sm:$0xff] %vm47_vm0, %v157_v19 }
 0x114   :  { %268 = shalt.err (!%p265_p6)
}
 0x115   :  { %s269_s15 = scalar_lea.hbm %s368_s3, 256 }
 0x116   :  { %p270_p7 = scmp.ne.s32.totalorder %s368_s3, %s269_s15  ;;  %p273_p8 = scmp.lt.u32.totalorder %s269_s15, %s368_s3 }
 0x118   :  { %p275_p9 = pnand %p273_p8, %p270_p7 }
 0x11a   :  { %278 = shalt.err (!%p275_p9)
}
 0x11b   :  { %172 = dma.vmem_to_hbm [thread:$0]  %s167_s12, 256, %s368_s3, [#allocation5], %s286_s22, %s286_s22, %s287_s23  }
 0x11c   :  { %283 = dma.done.wait [#allocation5], 256  }
 0x11d   :  { %284 = vsyncadd [#allocation5], 4294967040 }
 0x11e   :  { %176 = vsyncpa [#allocation4], 1 }
 0x11f   :  { %177 = vsyncpa [#allocation7], 1 }
 0x120   :  { %178 = vsyncpa [#allocation5], 1 }

</bundles_post_ra>
